<compile_context>
chip_gen: v7x
topology: tpu7x:2x2x1
jax: 0.10.0
libtpu: 0.0.40
codegen_flags: <defaults>
</compile_context>

<pallas_src>
import functools

import jax
import jax.numpy as jnp
from jax.experimental import pallas as pl
from jax.experimental.pallas import tpu as pltpu

LANE = 128          # lane width: fc3 outputs padded to a multiple of this
SUBLANE = 8         # f32 sublane tile: batch rounded up to a multiple of this
TB_MAX = 2048       # max batch-tile rows (~4.5 MiB VMEM footprint at 2048)
SPLIT_AT = 1024     # force >= 2 batch tiles at/above this many rows (v7x 2 TCs)


def _round_up(x, m):
    return ((x + m - 1) // m) * m


def dqn_kernel(x_ref, w1_ref, b1_ref, w2_ref, b2_ref, w3_ref, b3_ref, o_ref):
    # fc1 + relu   (bf16 MXU inputs, f32 accumulation & elementwise)
    h1 = jnp.dot(x_ref[...].astype(jnp.bfloat16), w1_ref[...],
                 preferred_element_type=jnp.float32)
    h1 = jnp.maximum(h1 + b1_ref[...], 0.0)
    # fc2 + relu
    h2 = jnp.dot(h1.astype(jnp.bfloat16), w2_ref[...],
                 preferred_element_type=jnp.float32)
    h2 = jnp.maximum(h2 + b2_ref[...], 0.0)
    # fc3 (lane-dense, 128-column padded); stored as bf16 to halve HBM writeback
    out = jnp.dot(h2.astype(jnp.bfloat16), w3_ref[...],
                  preferred_element_type=jnp.float32)
    o_ref[...] = (out + b3_ref[...]).astype(o_ref.dtype)
    # TODO(synk): if bundle dumps show vld/vst slot saturation / VMEM spills of
    # h1/h2 at large tiles, sub-chunk the batch tile with
    # lax.fori_loop(..., unroll=True) over ~256-row chunks.


def prepare_params(params):
    """One-time weight prep: pad fc3 to 128 output lanes, cast weights to bf16.

    Call once (e.g. after each optimizer step) and reuse so the pad/cast ops
    are not re-launched as separate XLA kernels on every forward.
    """
    w1, b1, w2, b2, w3, b3 = params
    action_size = w3.shape[1]
    n_pad = _round_up(max(action_size, LANE), LANE)
    w3p = jnp.zeros((w3.shape[0], n_pad), w3.dtype).at[:, :action_size].set(w3)
    b3p = jnp.zeros((1, n_pad), b3.dtype).at[:, :action_size].set(b3)
    prepped = (w1.astype(jnp.bfloat16), b1.astype(jnp.float32),
               w2.astype(jnp.bfloat16), b2.astype(jnp.float32),
               w3p.astype(jnp.bfloat16), b3p.astype(jnp.float32))
    return prepped, action_size


@functools.partial(jax.jit, static_argnames=("action_size",))
def dqn_forward(x, prepped, action_size):
    w1b, b1, w2b, b2, w3b, b3p = prepped
    B, state_size = x.shape
    h1_dim = w1b.shape[1]
    h2_dim = w2b.shape[1]
    n_pad = w3b.shape[1]

    # Pad the batch only up to a sublane multiple (never to a tile multiple).
    b_round = _round_up(B, SUBLANE)
    xp = x if b_round == B else jnp.pad(x, ((0, b_round - B), (0, 0)))

    # Balanced batch tiles; force >= 2 tiles for large batches so both v7x
    # TensorCores get work. The last tile may be ragged (Pallas masks OOB writes).
    n_tiles = pl.cdiv(b_round, TB_MAX)
    if b_round >= SPLIT_AT:
        n_tiles = max(n_tiles, 2)
    tb = _round_up(pl.cdiv(b_round, n_tiles), SUBLANE)
    grid = (pl.cdiv(b_round, tb),)

    # Weights/biases use constant index maps -> DMA'd once, VMEM-resident.
    const2d = lambda shape: pl.BlockSpec(shape, lambda i: (0, 0))

    flops = 2 * b_round * (state_size * h1_dim + h1_dim * h2_dim + h2_dim * n_pad)
    bytes_accessed = (
        xp.size * xp.dtype.itemsize                 # x in
        + b_round * n_pad * 2                       # bf16 out
        + (w1b.size + w2b.size + w3b.size) * 2      # bf16 weights (once)
        + (b1.size + b2.size + b3p.size) * 4        # f32 biases   (once)
    )

    out = pl.pallas_call(
        dqn_kernel,
        out_shape=jax.ShapeDtypeStruct((b_round, n_pad), jnp.bfloat16),
        grid=grid,
        in_specs=[
            pl.BlockSpec((tb, state_size), lambda i: (i, 0)),   # x: batch-tiled
            const2d(w1b.shape), const2d(b1.shape),
            const2d(w2b.shape), const2d(b2.shape),
            const2d(w3b.shape), const2d(b3p.shape),
        ],
        out_specs=pl.BlockSpec((tb, n_pad), lambda i: (i, 0)),
        compiler_params=pltpu.CompilerParams(
            dimension_semantics=("parallel",),                  # 2 TCs on v7x
        ),
        cost_estimate=pl.CostEstimate(
            flops=flops, transcendentals=0, bytes_accessed=bytes_accessed),
    )(xp, w1b, b1, w2b, b2, w3b, b3p)

    # Tiny slice + cast back to f32, fused under the same jit.
    return out[:B, :action_size].astype(jnp.float32)


def init_params(key, state_size, action_size):
    """Deterministic init mimicking nn.Linear's uniform(-1/sqrt(fan_in), 1/sqrt(fan_in))."""
    dims = [(state_size, 64), (64, 128), (128, action_size)]
    params = []
    for fan_in, fan_out in dims:
        kw, kb, key = jax.random.split(key, 3)
        bound = 1.0 / jnp.sqrt(jnp.float32(fan_in))
        w = jax.random.uniform(kw, (fan_in, fan_out), jnp.float32, -bound, bound)
        b = jax.random.uniform(kb, (1, fan_out), jnp.float32, -bound, bound)
        params += [w, b]
    return params


def reference_forward_f32(x, params):
    """Pure f32 reference — exactly the PyTorch module's math."""
    w1, b1, w2, b2, w3, b3 = params
    h1 = jnp.maximum(x @ w1 + b1, 0.0)
    h2 = jnp.maximum(h1 @ w2 + b2, 0.0)
    return h2 @ w3 + b3


def reference_forward_bf16(x, params):
    """Reference mirroring the kernel's bf16-MXU / f32-accumulate / bf16-store math."""
    w1, b1, w2, b2, w3, b3 = params
    bf = jnp.bfloat16
    h1 = jnp.maximum(
        jnp.dot(x.astype(bf), w1.astype(bf), preferred_element_type=jnp.float32) + b1, 0.0)
    h2 = jnp.maximum(
        jnp.dot(h1.astype(bf), w2.astype(bf), preferred_element_type=jnp.float32) + b2, 0.0)
    out = jnp.dot(h2.astype(bf), w3.astype(bf), preferred_element_type=jnp.float32) + b3
    return out.astype(bf).astype(jnp.float32)


if __name__ == "__main__":
    key = jax.random.PRNGKey(0)
    batch, state_size, action_size = 8, 16, 4

    kx, kp = jax.random.split(key)
    x = jax.random.normal(kx, (batch, state_size), jnp.float32)
    params = init_params(kp, state_size, action_size)

    prepped, n_actions = prepare_params(params)          # one-time weight prep
    out = dqn_forward(x, prepped, n_actions)
    out = jax.block_until_ready(out)

    assert out.shape == (batch, action_size)
    assert out.dtype == jnp.float32

    # Tight check vs a reference mirroring the kernel's bf16/f32 numerics.
    ref_bf = reference_forward_bf16(x, params)
    assert jnp.allclose(out, ref_bf, atol=2e-3, rtol=2e-3), "mismatch vs bf16-path reference"

    # Fidelity check vs the pure-f32 (PyTorch-equivalent) math.
    ref_f32 = reference_forward_f32(x, params)
    assert jnp.allclose(out, ref_f32, atol=5e-2, rtol=5e-2), "mismatch vs f32 reference"

    print("KERNEL_OK")
</pallas_src>

<mosaic_0001>
module attributes {stable_mosaic.version = 11 : i64} {
  func.func @dqn_kernel(%arg0: i32, %arg1: memref<8x16xf32, #tpu.memory_space<vmem>>, %arg2: memref<16x64xbf16, #tpu.memory_space<vmem>>, %arg3: memref<1x64xf32, #tpu.memory_space<vmem>>, %arg4: memref<64x128xbf16, #tpu.memory_space<vmem>>, %arg5: memref<1x128xf32, #tpu.memory_space<vmem>>, %arg6: memref<128x128xbf16, #tpu.memory_space<vmem>>, %arg7: memref<1x128xf32, #tpu.memory_space<vmem>>, %arg8: memref<8x128xbf16, #tpu.memory_space<vmem>>) attributes {dimension_semantics = [#tpu.dimension_semantics<parallel>], iteration_bounds = array<i64: 1>, scalar_prefetch = 0 : i64, scratch_operands = 0 : i64, tpu.core_type = #tpu.core_type<tc>, window_params = [{transform_indices = @transform_0, window_bounds = array<i64: 8, 16>}, {pipeline_mode = #tpu.pipeline_mode<synchronous>, transform_indices = @transform_1, window_bounds = array<i64: 16, 64>}, {pipeline_mode = #tpu.pipeline_mode<synchronous>, transform_indices = @transform_2, window_bounds = array<i64: 1, 64>}, {pipeline_mode = #tpu.pipeline_mode<synchronous>, transform_indices = @transform_3, window_bounds = array<i64: 64, 128>}, {pipeline_mode = #tpu.pipeline_mode<synchronous>, transform_indices = @transform_4, window_bounds = array<i64: 1, 128>}, {pipeline_mode = #tpu.pipeline_mode<synchronous>, transform_indices = @transform_5, window_bounds = array<i64: 128, 128>}, {pipeline_mode = #tpu.pipeline_mode<synchronous>, transform_indices = @transform_6, window_bounds = array<i64: 1, 128>}, {transform_indices = @transform_7, window_bounds = array<i64: 8, 128>}]} {
    %c0 = arith.constant 0 : index
    %c0_0 = arith.constant 0 : index
    %0 = vector.load %arg1[%c0, %c0_0] : memref<8x16xf32, #tpu.memory_space<vmem>>, vector<8x16xf32>
    %1 = arith.truncf %0 : vector<8x16xf32> to vector<8x16xbf16>
    %c0_1 = arith.constant 0 : index
    %c0_2 = arith.constant 0 : index
    %2 = vector.load %arg2[%c0_1, %c0_2] : memref<16x64xbf16, #tpu.memory_space<vmem>>, vector<16x64xbf16>
    %cst = arith.constant dense<0.000000e+00> : vector<8x64xf32>
    %3 = tpu.matmul %1, %2, %cst {dimension_numbers = #tpu.dot_dimension_numbers<[1], [0], [0], [1], [0, 0, 1, 1], [], []>} : vector<8x16xbf16>, vector<16x64xbf16>, vector<8x64xf32> -> vector<8x64xf32>
    %c0_3 = arith.constant 0 : index
    %c0_4 = arith.constant 0 : index
    %4 = vector.load %arg3[%c0_3, %c0_4] : memref<1x64xf32, #tpu.memory_space<vmem>>, vector<1x64xf32>
    %5 = vector.broadcast %4 : vector<1x64xf32> to vector<8x64xf32>
    %6 = arith.addf %3, %5 : vector<8x64xf32>
    %cst_5 = arith.constant 0.000000e+00 : f32
    %7 = vector.broadcast %cst_5 : f32 to vector<8x64xf32>
    %8 = arith.maximumf %6, %7 : vector<8x64xf32>
    %9 = arith.truncf %8 : vector<8x64xf32> to vector<8x64xbf16>
    %c0_6 = arith.constant 0 : index
    %c0_7 = arith.constant 0 : index
    %10 = vector.load %arg4[%c0_6, %c0_7] : memref<64x128xbf16, #tpu.memory_space<vmem>>, vector<64x128xbf16>
    %cst_8 = arith.constant dense<0.000000e+00> : vector<8x128xf32>
    %11 = tpu.matmul %9, %10, %cst_8 {dimension_numbers = #tpu.dot_dimension_numbers<[1], [0], [0], [1], [0, 0, 1, 1], [], []>} : vector<8x64xbf16>, vector<64x128xbf16>, vector<8x128xf32> -> vector<8x128xf32>
    %c0_9 = arith.constant 0 : index
    %c0_10 = arith.constant 0 : index
    %12 = vector.load %arg5[%c0_9, %c0_10] : memref<1x128xf32, #tpu.memory_space<vmem>>, vector<1x128xf32>
    %13 = vector.broadcast %12 : vector<1x128xf32> to vector<8x128xf32>
    %14 = arith.addf %11, %13 : vector<8x128xf32>
    %cst_11 = arith.constant 0.000000e+00 : f32
    %15 = vector.broadcast %cst_11 : f32 to vector<8x128xf32>
    %16 = arith.maximumf %14, %15 : vector<8x128xf32>
    %17 = arith.truncf %16 : vector<8x128xf32> to vector<8x128xbf16>
    %c0_12 = arith.constant 0 : index
    %c0_13 = arith.constant 0 : index
    %18 = vector.load %arg6[%c0_12, %c0_13] : memref<128x128xbf16, #tpu.memory_space<vmem>>, vector<128x128xbf16>
    %cst_14 = arith.constant dense<0.000000e+00> : vector<8x128xf32>
    %19 = tpu.matmul %17, %18, %cst_14 {dimension_numbers = #tpu.dot_dimension_numbers<[1], [0], [0], [1], [0, 0, 1, 1], [], []>} : vector<8x128xbf16>, vector<128x128xbf16>, vector<8x128xf32> -> vector<8x128xf32>
    %c0_15 = arith.constant 0 : index
    %c0_16 = arith.constant 0 : index
    %20 = vector.load %arg7[%c0_15, %c0_16] : memref<1x128xf32, #tpu.memory_space<vmem>>, vector<1x128xf32>
    %21 = vector.broadcast %20 : vector<1x128xf32> to vector<8x128xf32>
    %22 = arith.addf %19, %21 : vector<8x128xf32>
    %23 = arith.truncf %22 : vector<8x128xf32> to vector<8x128xbf16>
    %c0_17 = arith.constant 0 : index
    %c0_18 = arith.constant 0 : index
    %24 = vector.load %arg8[%c0_17, %c0_18] : memref<8x128xbf16, #tpu.memory_space<vmem>>, vector<8x128xbf16>
    tpu.vector_store %arg8[%c0_17, %c0_18], %23 {strides = array<i32>} : memref<8x128xbf16, #tpu.memory_space<vmem>>, vector<8x128xbf16>,
    return
  }
  func.func @transform_0(%arg0: i32) -> (i32, i32) {
    %c0_i32 = arith.constant 0 : i32
    %c0_i32_0 = arith.constant 0 : i32
    return %arg0, %c0_i32 : i32, i32
  }
  func.func @transform_1(%arg0: i32) -> (i32, i32) {
    %c0_i32 = arith.constant 0 : i32
    %c0_i32_0 = arith.constant 0 : i32
    %c0_i32_1 = arith.constant 0 : i32
    return %c0_i32, %c0_i32_0 : i32, i32
  }
  func.func @transform_2(%arg0: i32) -> (i32, i32) {
    %c0_i32 = arith.constant 0 : i32
    %c0_i32_0 = arith.constant 0 : i32
    %c0_i32_1 = arith.constant 0 : i32
    return %c0_i32, %c0_i32_0 : i32, i32
  }
  func.func @transform_3(%arg0: i32) -> (i32, i32) {
    %c0_i32 = arith.constant 0 : i32
    %c0_i32_0 = arith.constant 0 : i32
    %c0_i32_1 = arith.constant 0 : i32
    return %c0_i32, %c0_i32_0 : i32, i32
  }
  func.func @transform_4(%arg0: i32) -> (i32, i32) {
    %c0_i32 = arith.constant 0 : i32
    %c0_i32_0 = arith.constant 0 : i32
    %c0_i32_1 = arith.constant 0 : i32
    return %c0_i32, %c0_i32_0 : i32, i32
  }
  func.func @transform_5(%arg0: i32) -> (i32, i32) {
    %c0_i32 = arith.constant 0 : i32
    %c0_i32_0 = arith.constant 0 : i32
    %c0_i32_1 = arith.constant 0 : i32
    return %c0_i32, %c0_i32_0 : i32, i32
  }
  func.func @transform_6(%arg0: i32) -> (i32, i32) {
    %c0_i32 = arith.constant 0 : i32
    %c0_i32_0 = arith.constant 0 : i32
    %c0_i32_1 = arith.constant 0 : i32
    return %c0_i32, %c0_i32_0 : i32, i32
  }
  func.func @transform_7(%arg0: i32) -> (i32, i32) {
    %c0_i32 = arith.constant 0 : i32
    %c0_i32_0 = arith.constant 0 : i32
    return %arg0, %c0_i32 : i32, i32
  }
}

</mosaic_0001>

<bundles_post_ra>
// kernel: dqn_forward.1
= control target key start
LH: loop header
LB: loop body
LE: loop exit
PB: predicated region body
PF: predicated region fallthrough
CT: control target
= control target key end

     0   :  { %12 = vsyncpa [#allocation3], 0  ;;  %s652_s0 = inlined_call_operand.hbm [shape: f32[8,16], index: 0, kind: input, shape index: {}]   ;;  %s653_s1 = inlined_call_operand.hbm [shape: bf16[16,64], index: 1, kind: input, shape index: {}]   ;;  %s654_s2 = inlined_call_operand.vmem [shape: f32[1,64], index: 2, kind: input, shape index: {}]   ;;  %s655_s3 = inlined_call_operand.hbm [shape: bf16[64,128], index: 3, kind: input, shape index: {}]   ;;  %s656_s4 = inlined_call_operand.vmem [shape: f32[1,128], index: 4, kind: input, shape index: {}]   ;;  %s657_s5 = inlined_call_operand.hbm [shape: bf16[128,128], index: 5, kind: input, shape index: {}]   ;;  %s658_s6 = inlined_call_operand.vmem [shape: f32[1,128], index: 6, kind: input, shape index: {}]   ;;  %s659_s7 = inlined_call_operand.vmem [shape: bf16[8,128], index: 7, kind: output, shape index: {}]  }
   0x1   :  { %13 = vsyncpa [#allocation5], 0 }
   0x2   :  { %14 = vsyncpa [#allocation8], 0  ;;  %s535_s24 = smov [#allocation4]   ;;  %s441_s28 = scalar_lea.hbm %s653_s1, 128 }
   0x3   :  { %s30_s25 = sshll.u32 %s535_s24, 4  ;;  %p442_p0 = scmp.ne.s32.totalorder %s653_s1, %s441_s28  ;;  %s31_s25 = int_to_ptr.vmem [resolvable:$true] %s30_s25 }
   0x4   :  { %p445_p1 = scmp.lt.u32.totalorder %s441_s28, %s653_s1 }
   0x6   :  { %p447_p2 = pnand %p445_p1, %p442_p0 }
   0x8   :  { %450 = shalt.err (!%p447_p2)
}
   0x9   :  { %s451_s10 = scalar_lea.vmem %s31_s25, 128  ;;  %p456_p4 = scmp.lt.s32.totalorder %s31_s25, %s31_s25 }
   0xa   :  { %p452_p3 = scmp.ne.s32.totalorder %s31_s25, %s451_s10  ;;  %p457_p5 = scmp.lt.s32.totalorder %s451_s10, %s451_s10 }
   0xc   :  { %p458_p6 = por %p457_p5, %p456_p4 }
   0xe   :  { %p459_p7 = pnand %p458_p6, %p452_p3 }
  0x10   :  { %462 = shalt.err (!%p459_p7)
}
  0x11   :  { %s536_s11 = smov 64   ;;  %s537_s12 = smov 4  }
  0x12   :  { %36 = dma.hbm_to_vmem [thread:$0]  %s653_s1, 128, %s31_s25, [#allocation5], %s536_s11, %s536_s11, %s537_s12  }
  0x13   :  { %s538_s15 = smov [#allocation2]   ;;  %s539_s17 = smov [#allocation6]  }
  0x14   :  { %s21_s16 = sshll.u32 %s538_s15, 4  ;;  %s44_s18 = sshll.u32 %s539_s17, 4  ;;  %s22_s16 = int_to_ptr.vmem [resolvable:$true] %s21_s16  ;;  %s45_s18 = int_to_ptr.vmem [resolvable:$true] %s44_s18 }
  0x15   :  { %s463_s21 = scalar_lea.hbm %s652_s0, 128 }
  0x16   :  { %p464_p8 = scmp.ne.s32.totalorder %s652_s0, %s463_s21  ;;  %p467_p9 = scmp.lt.u32.totalorder %s463_s21, %s652_s0 }
  0x18   :  { %p469_p10 = pnand %p467_p9, %p464_p8 }
  0x1a   :  { %472 = shalt.err (!%p469_p10)
}
  0x1b   :  { %s473_s1 = scalar_lea.vmem %s22_s16, 128  ;;  %p478_p12 = scmp.lt.s32.totalorder %s22_s16, %s22_s16 }
  0x1c   :  { %p474_p11 = scmp.ne.s32.totalorder %s22_s16, %s473_s1  ;;  %p479_p13 = scmp.lt.s32.totalorder %s473_s1, %s473_s1 }
  0x1e   :  { %p480_p0 = por %p479_p13, %p478_p12 }
  0x20   :  { %p481_p1 = pnand %p480_p0, %p474_p11 }
  0x22   :  { %484 = shalt.err (!%p481_p1)
}
  0x23   :  { %24 = dma.hbm_to_vmem [thread:$0]  %s652_s0, 128, %s22_s16, [#allocation3]  }
  0x24   :  { %s485_s30 = scalar_lea.hbm %s655_s3, 512 }
  0x25   :  { %p486_p2 = scmp.ne.s32.totalorder %s655_s3, %s485_s30  ;;  %p489_p3 = scmp.lt.u32.totalorder %s485_s30, %s655_s3 }
  0x27   :  { %p491_p4 = pnand %p489_p3, %p486_p2 }
  0x29   :  { %494 = shalt.err (!%p491_p4)
}
  0x2a   :  { %s495_s14 = scalar_lea.vmem %s45_s18, 512  ;;  %p500_p6 = scmp.lt.s32.totalorder %s45_s18, %s45_s18 }
  0x2b   :  { %p496_p5 = scmp.ne.s32.totalorder %s45_s18, %s495_s14  ;;  %p501_p7 = scmp.lt.s32.totalorder %s495_s14, %s495_s14 }
  0x2d   :  { %p502_p8 = por %p501_p7, %p500_p6 }
  0x2f   :  { %p503_p9 = pnand %p502_p8, %p496_p5 }
  0x31   :  { %506 = shalt.err (!%p503_p9)
}
  0x32   :  { %50 = dma.hbm_to_vmem [thread:$0]  %s655_s3, 512, %s45_s18, [#allocation5], %s536_s11, %s536_s11, %s537_s12  }
  0x33   :  { %s540_s16 = smov [#allocation7]   ;;  %s507_s21 = scalar_lea.hbm %s657_s5, 1024 }
  0x34   :  { %s58_s17 = sshll.u32 %s540_s16, 4  ;;  %p508_p10 = scmp.ne.s32.totalorder %s657_s5, %s507_s21  ;;  %s59_s17 = int_to_ptr.vmem [resolvable:$true] %s58_s17 }
  0x35   :  { %p511_p11 = scmp.lt.u32.totalorder %s507_s21, %s657_s5 }
  0x37   :  { %p513_p12 = pnand %p511_p11, %p508_p10 }
  0x39   :  { %516 = shalt.err (!%p513_p12)
}
  0x3a   :  { %s517_s1 = scalar_lea.vmem %s59_s17, 1024  ;;  %p522_p0 = scmp.lt.s32.totalorder %s59_s17, %s59_s17 }
  0x3b   :  { %p518_p13 = scmp.ne.s32.totalorder %s59_s17, %s517_s1  ;;  %p523_p1 = scmp.lt.s32.totalorder %s517_s1, %s517_s1 }
  0x3d   :  { %p524_p2 = por %p523_p1, %p522_p0 }
  0x3f   :  { %p525_p3 = pnand %p524_p2, %p518_p13 }
  0x41   :  { %528 = shalt.err (!%p525_p3)
}
  0x42   :  { %64 = dma.hbm_to_vmem [thread:$0]  %s657_s5, 1024, %s59_s17, [#allocation8], %s536_s11, %s536_s11, %s537_s12  }
  0x43   :  { %529 = dma.done.wait [#allocation3], 128  }
  0x44   :  { %530 = vsyncadd [#allocation3], 4294967168 }
  0x45   :  { %531 = dma.done.wait [#allocation5], 640  }
  0x46   :  { %532 = vsyncadd [#allocation5], 4294966656 }
  0x47   :  { %533 = dma.done.wait [#allocation8], 1024  }
  0x48   :  { %534 = vsyncadd [#allocation8], 4294966272  ;;  %v541_v0 = vmov 0.0   ;;  %vm542_vm0 = vmmov 0   ;;  %v428_v1 = vld [vmem:[#allocation4] sm:$0xff]   ;;  %v80_v2 = vld [vmem:[#allocation2] sm:$0xff] }
  0x49   :  { %382 = vmatprep.subr.bf16.mxu1 %v541_v0  ;;  %384 = vmatprep.mubr.msk.bf16.mxu1 %vm542_vm0, %v541_v0  ;;  %v81_v3 = vpack.c.bf16 %v80_v2, %v80_v2  ;;  %vm97_vm1 = vcmask 130048   ;;  %v429_v4 = vld [vmem:[#allocation6] sm:$0xff]   ;;  %v430_v5 = vld [vmem:[#allocation6 + $0x8] sm:$0xff]   ;;  %v431_v6 = vld [vmem:[#allocation6 + $0x10] sm:$0xff]   ;;  %vm182_vm2 = vcmask 523264  }
  0x4a   :  { %400 = vmatprep.subr.bf16.mxu0 %v541_v0  ;;  %416 = vmatprep.mubr.msk.bf16.mxu0 %vm542_vm0, %v541_v0  ;;  %v432_v7 = vld [vmem:[#allocation6 + $0x18] sm:$0xff]   ;;  %v433_v8 = vld [vmem:[#allocation7] sm:$0xff]   ;;  %v434_v9 = vld [vmem:[#allocation7 + $0x8] sm:$0xff]  }
  0x4b   :  { %383 = vmatpush3.bf16.msra.mxu1 %v428_v1  ;;  %401 = vmatpush3.bf16.msra.mxu0 %v433_v8  ;;  %v435_v10 = vld [vmem:[#allocation7 + $0x10] sm:$0xff]   ;;  %v436_v11 = vld [vmem:[#allocation7 + $0x18] sm:$0xff]   ;;  %v437_v12 = vld [vmem:[#allocation7 + $0x20] sm:$0xff]  }
  0x4c   :  { %388 = vmatprep.subr.bf16.mxu1 %v541_v0  ;;  %402 = vmatprep.subr.bf16.mxu0 %v541_v0  ;;  %v438_v13 = vld [vmem:[#allocation7 + $0x28] sm:$0xff]   ;;  %v348_v14 = vld [vmem:[%s654_s2] ss:$0 sm:$0xff]  ;;  %v440_v23 = vld [vmem:[#allocation7 + $0x38] sm:$0xff]  }
  0x4d   :  { %v439_v22 = vld [vmem:[#allocation7 + $0x30] sm:$0xff]  }
  0x4e   :  { %385 = vmatmul.mubr.msk.bf16.vlgmr.msra.gmra.mrb[0].mxu1 %vm97_vm1, %v81_v3  ;;  %v351_v24 = vld [vmem:[%s656_s4] ss:$0 sm:$0xff] }
  0x4f   :  { %389 = vmatpush3.bf16.msra.mxu1 %v429_v4  ;;  %396 = vmatprep.mubr.msk.bf16.mxu1 %vm542_vm0, %v541_v0  ;;  %v357_v32 = vld [vmem:[%s658_s6] ss:$0 sm:$0xff] }
  0x50   :  { %390 = vmatprep.subr.bf16.mxu1 %v541_v0  ;;  %403 = vmatpush3.bf16.msra.mxu0 %v434_v9 }
  0x51   :  { %404 = vmatprep.subr.bf16.mxu0 %v541_v0 }
  0x53   :  { %391 = vmatpush3.bf16.msra.mxu1 %v430_v5 }
  0x54   :  { %392 = vmatprep.subr.bf16.mxu1 %v541_v0  ;;  %405 = vmatpush3.bf16.msra.mxu0 %v435_v10 }
  0x55   :  { %406 = vmatprep.subr.bf16.mxu0 %v541_v0 }
  0x57   :  { %393 = vmatpush3.bf16.msra.mxu1 %v431_v6 }
  0x58   :  { %394 = vmatprep.subr.bf16.mxu1 %v541_v0  ;;  %407 = vmatpush3.bf16.msra.mxu0 %v436_v11 }
  0x59   :  { %408 = vmatprep.subr.bf16.mxu0 %v541_v0 }
  0x5b   :  { %395 = vmatpush3.bf16.msra.mxu1 %v432_v7 }
  0x5c   :  { %409 = vmatpush3.bf16.msra.mxu0 %v437_v12 }
  0x5d   :  { %410 = vmatprep.subr.bf16.mxu0 %v541_v0 }
  0x60   :  { %411 = vmatpush3.bf16.msra.mxu0 %v438_v13 }
  0x61   :  { %412 = vmatprep.subr.bf16.mxu0 %v541_v0 }
  0x64   :  { %413 = vmatpush3.bf16.msra.mxu0 %v439_v22 }
  0x65   :  { %414 = vmatprep.subr.bf16.mxu0 %v541_v0 }
  0x68   :  { %415 = vmatpush3.bf16.msra.mxu0 %v440_v23 }
 0x121   :  { %v135_v15 = vpop.f32.mrb[0].mxu1 }
 0x122   :  { %v136_v16 = vadd.f32 %v348_v14, %v135_v15  ;;  %v386_v17 = vpop.f32.mrb[1].mxu1 }
 0x123   :  { %v138_v18 = vpop.f32.mrb[2].mxu1 }
 0x124   :  { %v141_v19 = vmax.f32 %v136_v16, 0.0  ;;  %v387_v20 = vpop.f32.mrb[3].mxu1 }
 0x126   :  { %v142_v21 = vpack.c.bf16 %v141_v19, %v141_v19 }
 0x128   :  { %397 = vmatmul.mubr.msk.bf16.vlgmr.msra.gmra.mrb[4].mxu1 %vm182_vm2, %v142_v21 }
 0x1fb   :  { %v220_v25 = vpop.f32.mrb[4].mxu1 }
 0x1fc   :  { %v221_v26 = vadd.f32 %v351_v24, %v220_v25  ;;  %v398_v27 = vpop.f32.mrb[5].mxu1 }
 0x1fd   :  { %v223_v28 = vpop.f32.mrb[6].mxu1 }
 0x1fe   :  { %v226_v29 = vmax.f32 %v221_v26, 0.0  ;;  %v399_v30 = vpop.f32.mrb[7].mxu1 }
 0x200   :  { %v227_v31 = vpack.c.bf16 %v226_v29, %v226_v29 }
 0x202   :  { %417 = vmatmul.mubr.bf16.vlgmr.msra.gmra.mrb[0].mxu0 %v227_v31 }
 0x2d5   :  { %v333_v33 = vpop.f32.mrb[0].mxu0 }
 0x2d6   :  { %v334_v34 = vadd.f32 %v357_v32, %v333_v33  ;;  %v418_v35 = vpop.f32.mrb[1].mxu0 }
 0x2d7   :  { %v336_v36 = vpop.f32.mrb[2].mxu0 }
 0x2d8   :  { %v339_v37 = vpack.c.bf16 %v334_v34, %v334_v34  ;;  %v419_v38 = vpop.f32.mrb[3].mxu0 }
 0x2da   :  { %340 = vst [vmem:[%s659_s7] sm:$0xf] %v339_v37 }
 0x2db   :  { %345 = vsyncpa [#allocation3], 1 }
 0x2dc   :  { %346 = vsyncpa [#allocation5], 1 }
 0x2dd   :  { %347 = vsyncpa [#allocation8], 1 }

</bundles_post_ra>
